<compile_context>
chip_gen: v6e
topology: v6e:2x2x1
jax: 0.10.0
libtpu: 0.0.40
codegen_flags: <defaults>
</compile_context>

<pallas_src>
import jax
import jax.numpy as jnp
from jax.experimental import pallas as pl
from jax.experimental.pallas import tpu as pltpu

IN_DIM = 6
PAD_IN = 8      # sublane-aligned first-layer fan-in
HIDDEN = 256
OUT_DIM = 4


def _layer(h, w_ref, b_ref, relu):
    # Cast activations to the weight dtype (f32 or bf16) for the MXU; always
    # accumulate in f32 and keep bias add / ReLU in f32 (v5e has no bf16 VPU).
    y = jnp.dot(h.astype(w_ref.dtype), w_ref[...],
                preferred_element_type=jnp.float32) + b_ref[...].astype(jnp.float32)
    return jnp.maximum(y, 0.0) if relu else y


def dqn_kernel(x_ref,
               w1_ref, b1_ref, w2_ref, b2_ref, w3_ref, b3_ref,
               w4_ref, b4_ref, w5_ref, b5_ref, w6_ref, b6_ref,
               o_ref):
    # Whole 6-layer MLP for one batch tile runs VMEM-resident on the MXU.
    h = x_ref[...]
    h = _layer(h, w1_ref, b1_ref, True)
    h = _layer(h, w2_ref, b2_ref, True)
    h = _layer(h, w3_ref, b3_ref, True)
    h = _layer(h, w4_ref, b4_ref, True)
    h = _layer(h, w5_ref, b5_ref, True)
    o_ref[...] = _layer(h, w6_ref, b6_ref, False).astype(o_ref.dtype)


def dqn_forward(x, params, tile_b=256):
    """x: (B, 6). params: list of (W (in,out), b (1,out)); W may be f32 or bf16."""
    B = x.shape[0]
    assert x.shape[1] == IN_DIM

    # Batch tile: sublane-aligned, no bigger than the (padded) batch.
    b_pad8 = pl.cdiv(B, 8) * 8
    tile_b = max(8, min((tile_b // 8) * 8, b_pad8))
    Bp = pl.cdiv(B, tile_b) * tile_b
    grid = (Bp // tile_b,)

    # Zero-pad features 6 -> 8 and batch B -> Bp (zeros are inert: 0 @ W = 0,
    # padded rows are sliced off below).
    xp = jnp.zeros((Bp, PAD_IN), jnp.float32).at[:B, :IN_DIM].set(
        x.astype(jnp.float32))

    flat = []
    in_specs = [pl.BlockSpec((tile_b, PAD_IN), lambda i: (i, 0))]
    for li, (w, b) in enumerate(params):
        if li == 0:
            # Pad fc1 weight (6, 256) -> (8, 256) to match padded input.
            w = jnp.zeros((PAD_IN, w.shape[1]), w.dtype).at[:IN_DIM, :].set(w)
        flat.extend([w, b])
        # Weights/biases: same block every grid step -> stay VMEM-resident.
        in_specs.append(pl.BlockSpec(w.shape, lambda i: (0, 0)))
        in_specs.append(pl.BlockSpec(b.shape, lambda i: (0, 0)))

    param_bytes = sum(int(a.size) * a.dtype.itemsize for a in flat)
    flops = 2 * Bp * (PAD_IN * HIDDEN + 4 * HIDDEN * HIDDEN + HIDDEN * OUT_DIM)
    bytes_accessed = param_bytes + Bp * (PAD_IN + OUT_DIM) * 4

    out = pl.pallas_call(
        dqn_kernel,
        out_shape=jax.ShapeDtypeStruct((Bp, OUT_DIM), jnp.float32),
        grid=grid,
        in_specs=in_specs,
        out_specs=pl.BlockSpec((tile_b, OUT_DIM), lambda i: (i, 0)),
        compiler_params=pltpu.CompilerParams(
            dimension_semantics=("parallel",)),
        cost_estimate=pl.CostEstimate(
            flops=flops, transcendentals=0, bytes_accessed=bytes_accessed),
    )(xp, *flat)
    return out[:B]


def init_params(key, dtype=jnp.float32):
    # PyTorch nn.Linear default init: U(-1/sqrt(fan_in), 1/sqrt(fan_in)).
    dims = [(IN_DIM, HIDDEN)] + [(HIDDEN, HIDDEN)] * 4 + [(HIDDEN, OUT_DIM)]
    params = []
    for (fan_in, fan_out) in dims:
        key, kw, kb = jax.random.split(key, 3)
        bound = 1.0 / jnp.sqrt(fan_in)
        w = jax.random.uniform(kw, (fan_in, fan_out), jnp.float32, -bound, bound)
        b = jax.random.uniform(kb, (1, fan_out), jnp.float32, -bound, bound)
        params.append((w.astype(dtype), b))
    return params


def dqn_reference(x, params):
    # Pure-JAX reference with the same dtype semantics as the kernel
    # (cast to weight dtype for the dot, f32 accumulation, f32 bias/ReLU).
    h = x.astype(jnp.float32)
    for i, (w, b) in enumerate(params):
        h = jnp.dot(h.astype(w.dtype), w,
                    preferred_element_type=jnp.float32) + b.astype(jnp.float32)
        if i < len(params) - 1:
            h = jnp.maximum(h, 0.0)
    return h


if __name__ == "__main__":
    key = jax.random.PRNGKey(0)
    key, kx = jax.random.split(key)
    B = 8  # tiny acting-path batch
    x = jax.random.normal(kx, (B, IN_DIM), jnp.float32)

    # --- f32 weights: exact PyTorch semantics ---
    params = init_params(key, jnp.float32)
    out = jax.block_until_ready(dqn_forward(x, params))
    ref = dqn_reference(x, params)
    assert out.shape == (B, OUT_DIM)
    assert jnp.allclose(out, ref, atol=1e-4, rtol=1e-4)

    # --- bf16 weights (halved weight DMA, bf16 MXU), f32 accumulation ---
    params_bf16 = [(w.astype(jnp.bfloat16), b) for w, b in params]
    out_bf16 = jax.block_until_ready(dqn_forward(x, params_bf16))
    ref_bf16 = dqn_reference(x, params_bf16)
    assert jnp.allclose(out_bf16, ref_bf16, atol=1e-2, rtol=1e-2)

    # --- larger, non-tile-multiple batch exercises the grid/pipelining path ---
    key, kx2 = jax.random.split(key)
    x_big = jax.random.normal(kx2, (1000, IN_DIM), jnp.float32)
    out_big = jax.block_until_ready(dqn_forward(x_big, params, tile_b=256))
    ref_big = dqn_reference(x_big, params)
    assert out_big.shape == (1000, OUT_DIM)
    assert jnp.allclose(out_big, ref_big, atol=1e-4, rtol=1e-4)

    print("KERNEL_OK")
</pallas_src>

<mosaic_0001>
module attributes {stable_mosaic.version = 11 : i64} {
  func.func @dqn_kernel(%arg0: i32, %arg1: memref<8x8xf32, #tpu.memory_space<vmem>>, %arg2: memref<8x256xf32, #tpu.memory_space<vmem>>, %arg3: memref<1x256xf32, #tpu.memory_space<vmem>>, %arg4: memref<256x256xf32, #tpu.memory_space<vmem>>, %arg5: memref<1x256xf32, #tpu.memory_space<vmem>>, %arg6: memref<256x256xf32, #tpu.memory_space<vmem>>, %arg7: memref<1x256xf32, #tpu.memory_space<vmem>>, %arg8: memref<256x256xf32, #tpu.memory_space<vmem>>, %arg9: memref<1x256xf32, #tpu.memory_space<vmem>>, %arg10: memref<256x256xf32, #tpu.memory_space<vmem>>, %arg11: memref<1x256xf32, #tpu.memory_space<vmem>>, %arg12: memref<256x4xf32, #tpu.memory_space<vmem>>, %arg13: memref<1x4xf32, #tpu.memory_space<vmem>>, %arg14: memref<8x4xf32, #tpu.memory_space<vmem>>) attributes {dimension_semantics = [#tpu.dimension_semantics<parallel>], iteration_bounds = array<i64: 1>, scalar_prefetch = 0 : i64, scratch_operands = 0 : i64, tpu.core_type = #tpu.core_type<tc>, window_params = [{transform_indices = @transform_0, window_bounds = array<i64: 8, 8>}, {pipeline_mode = #tpu.pipeline_mode<synchronous>, transform_indices = @transform_1, window_bounds = array<i64: 8, 256>}, {pipeline_mode = #tpu.pipeline_mode<synchronous>, transform_indices = @transform_2, window_bounds = array<i64: 1, 256>}, {pipeline_mode = #tpu.pipeline_mode<synchronous>, transform_indices = @transform_3, window_bounds = array<i64: 256, 256>}, {pipeline_mode = #tpu.pipeline_mode<synchronous>, transform_indices = @transform_4, window_bounds = array<i64: 1, 256>}, {pipeline_mode = #tpu.pipeline_mode<synchronous>, transform_indices = @transform_5, window_bounds = array<i64: 256, 256>}, {pipeline_mode = #tpu.pipeline_mode<synchronous>, transform_indices = @transform_6, window_bounds = array<i64: 1, 256>}, {pipeline_mode = #tpu.pipeline_mode<synchronous>, transform_indices = @transform_7, window_bounds = array<i64: 256, 256>}, {pipeline_mode = #tpu.pipeline_mode<synchronous>, transform_indices = @transform_8, window_bounds = array<i64: 1, 256>}, {pipeline_mode = #tpu.pipeline_mode<synchronous>, transform_indices = @transform_9, window_bounds = array<i64: 256, 256>}, {pipeline_mode = #tpu.pipeline_mode<synchronous>, transform_indices = @transform_10, window_bounds = array<i64: 1, 256>}, {pipeline_mode = #tpu.pipeline_mode<synchronous>, transform_indices = @transform_11, window_bounds = array<i64: 256, 4>}, {pipeline_mode = #tpu.pipeline_mode<synchronous>, transform_indices = @transform_12, window_bounds = array<i64: 1, 4>}, {transform_indices = @transform_13, window_bounds = array<i64: 8, 4>}]} {
    %c0 = arith.constant 0 : index
    %c0_0 = arith.constant 0 : index
    %0 = vector.load %arg1[%c0, %c0_0] : memref<8x8xf32, #tpu.memory_space<vmem>>, vector<8x8xf32>
    %c0_1 = arith.constant 0 : index
    %c0_2 = arith.constant 0 : index
    %1 = vector.load %arg2[%c0_1, %c0_2] : memref<8x256xf32, #tpu.memory_space<vmem>>, vector<8x256xf32>
    %cst = arith.constant dense<0.000000e+00> : vector<8x256xf32>
    %2 = tpu.matmul %0, %1, %cst {dimension_numbers = #tpu.dot_dimension_numbers<[1], [0], [0], [1], [0, 0, 1, 1], [], []>} : vector<8x8xf32>, vector<8x256xf32>, vector<8x256xf32> -> vector<8x256xf32>
    %c0_3 = arith.constant 0 : index
    %c0_4 = arith.constant 0 : index
    %3 = vector.load %arg3[%c0_3, %c0_4] : memref<1x256xf32, #tpu.memory_space<vmem>>, vector<1x256xf32>
    %4 = vector.broadcast %3 : vector<1x256xf32> to vector<8x256xf32>
    %5 = arith.addf %2, %4 : vector<8x256xf32>
    %cst_5 = arith.constant 0.000000e+00 : f32
    %6 = vector.broadcast %cst_5 : f32 to vector<8x256xf32>
    %7 = arith.maximumf %5, %6 : vector<8x256xf32>
    %c0_6 = arith.constant 0 : index
    %c0_7 = arith.constant 0 : index
    %8 = vector.load %arg4[%c0_6, %c0_7] : memref<256x256xf32, #tpu.memory_space<vmem>>, vector<256x256xf32>
    %cst_8 = arith.constant dense<0.000000e+00> : vector<8x256xf32>
    %9 = tpu.matmul %7, %8, %cst_8 {dimension_numbers = #tpu.dot_dimension_numbers<[1], [0], [0], [1], [0, 0, 1, 1], [], []>} : vector<8x256xf32>, vector<256x256xf32>, vector<8x256xf32> -> vector<8x256xf32>
    %c0_9 = arith.constant 0 : index
    %c0_10 = arith.constant 0 : index
    %10 = vector.load %arg5[%c0_9, %c0_10] : memref<1x256xf32, #tpu.memory_space<vmem>>, vector<1x256xf32>
    %11 = vector.broadcast %10 : vector<1x256xf32> to vector<8x256xf32>
    %12 = arith.addf %9, %11 : vector<8x256xf32>
    %cst_11 = arith.constant 0.000000e+00 : f32
    %13 = vector.broadcast %cst_11 : f32 to vector<8x256xf32>
    %14 = arith.maximumf %12, %13 : vector<8x256xf32>
    %c0_12 = arith.constant 0 : index
    %c0_13 = arith.constant 0 : index
    %15 = vector.load %arg6[%c0_12, %c0_13] : memref<256x256xf32, #tpu.memory_space<vmem>>, vector<256x256xf32>
    %cst_14 = arith.constant dense<0.000000e+00> : vector<8x256xf32>
    %16 = tpu.matmul %14, %15, %cst_14 {dimension_numbers = #tpu.dot_dimension_numbers<[1], [0], [0], [1], [0, 0, 1, 1], [], []>} : vector<8x256xf32>, vector<256x256xf32>, vector<8x256xf32> -> vector<8x256xf32>
    %c0_15 = arith.constant 0 : index
    %c0_16 = arith.constant 0 : index
    %17 = vector.load %arg7[%c0_15, %c0_16] : memref<1x256xf32, #tpu.memory_space<vmem>>, vector<1x256xf32>
    %18 = vector.broadcast %17 : vector<1x256xf32> to vector<8x256xf32>
    %19 = arith.addf %16, %18 : vector<8x256xf32>
    %cst_17 = arith.constant 0.000000e+00 : f32
    %20 = vector.broadcast %cst_17 : f32 to vector<8x256xf32>
    %21 = arith.maximumf %19, %20 : vector<8x256xf32>
    %c0_18 = arith.constant 0 : index
    %c0_19 = arith.constant 0 : index
    %22 = vector.load %arg8[%c0_18, %c0_19] : memref<256x256xf32, #tpu.memory_space<vmem>>, vector<256x256xf32>
    %cst_20 = arith.constant dense<0.000000e+00> : vector<8x256xf32>
    %23 = tpu.matmul %21, %22, %cst_20 {dimension_numbers = #tpu.dot_dimension_numbers<[1], [0], [0], [1], [0, 0, 1, 1], [], []>} : vector<8x256xf32>, vector<256x256xf32>, vector<8x256xf32> -> vector<8x256xf32>
    %c0_21 = arith.constant 0 : index
    %c0_22 = arith.constant 0 : index
    %24 = vector.load %arg9[%c0_21, %c0_22] : memref<1x256xf32, #tpu.memory_space<vmem>>, vector<1x256xf32>
    %25 = vector.broadcast %24 : vector<1x256xf32> to vector<8x256xf32>
    %26 = arith.addf %23, %25 : vector<8x256xf32>
    %cst_23 = arith.constant 0.000000e+00 : f32
    %27 = vector.broadcast %cst_23 : f32 to vector<8x256xf32>
    %28 = arith.maximumf %26, %27 : vector<8x256xf32>
    %c0_24 = arith.constant 0 : index
    %c0_25 = arith.constant 0 : index
    %29 = vector.load %arg10[%c0_24, %c0_25] : memref<256x256xf32, #tpu.memory_space<vmem>>, vector<256x256xf32>
    %cst_26 = arith.constant dense<0.000000e+00> : vector<8x256xf32>
    %30 = tpu.matmul %28, %29, %cst_26 {dimension_numbers = #tpu.dot_dimension_numbers<[1], [0], [0], [1], [0, 0, 1, 1], [], []>} : vector<8x256xf32>, vector<256x256xf32>, vector<8x256xf32> -> vector<8x256xf32>
    %c0_27 = arith.constant 0 : index
    %c0_28 = arith.constant 0 : index
    %31 = vector.load %arg11[%c0_27, %c0_28] : memref<1x256xf32, #tpu.memory_space<vmem>>, vector<1x256xf32>
    %32 = vector.broadcast %31 : vector<1x256xf32> to vector<8x256xf32>
    %33 = arith.addf %30, %32 : vector<8x256xf32>
    %cst_29 = arith.constant 0.000000e+00 : f32
    %34 = vector.broadcast %cst_29 : f32 to vector<8x256xf32>
    %35 = arith.maximumf %33, %34 : vector<8x256xf32>
    %c0_30 = arith.constant 0 : index
    %c0_31 = arith.constant 0 : index
    %36 = vector.load %arg12[%c0_30, %c0_31] : memref<256x4xf32, #tpu.memory_space<vmem>>, vector<256x4xf32>
    %cst_32 = arith.constant dense<0.000000e+00> : vector<8x4xf32>
    %37 = tpu.matmul %35, %36, %cst_32 {dimension_numbers = #tpu.dot_dimension_numbers<[1], [0], [0], [1], [0, 0, 1, 1], [], []>} : vector<8x256xf32>, vector<256x4xf32>, vector<8x4xf32> -> vector<8x4xf32>
    %c0_33 = arith.constant 0 : index
    %c0_34 = arith.constant 0 : index
    %38 = vector.load %arg13[%c0_33, %c0_34] : memref<1x4xf32, #tpu.memory_space<vmem>>, vector<1x4xf32>
    %39 = vector.broadcast %38 : vector<1x4xf32> to vector<8x4xf32>
    %40 = arith.addf %37, %39 : vector<8x4xf32>
    %c0_35 = arith.constant 0 : index
    %c0_36 = arith.constant 0 : index
    %41 = vector.load %arg14[%c0_35, %c0_36] : memref<8x4xf32, #tpu.memory_space<vmem>>, vector<8x4xf32>
    tpu.vector_store %arg14[%c0_35, %c0_36], %40 {strides = array<i32>} : memref<8x4xf32, #tpu.memory_space<vmem>>, vector<8x4xf32>,
    return
  }
  func.func @transform_0(%arg0: i32) -> (i32, i32) {
    %c0_i32 = arith.constant 0 : i32
    %c0_i32_0 = arith.constant 0 : i32
    return %arg0, %c0_i32 : i32, i32
  }
  func.func @transform_1(%arg0: i32) -> (i32, i32) {
    %c0_i32 = arith.constant 0 : i32
    %c0_i32_0 = arith.constant 0 : i32
    %c0_i32_1 = arith.constant 0 : i32
    return %c0_i32, %c0_i32_0 : i32, i32
  }
  func.func @transform_2(%arg0: i32) -> (i32, i32) {
    %c0_i32 = arith.constant 0 : i32
    %c0_i32_0 = arith.constant 0 : i32
    %c0_i32_1 = arith.constant 0 : i32
    return %c0_i32, %c0_i32_0 : i32, i32
  }
  func.func @transform_3(%arg0: i32) -> (i32, i32) {
    %c0_i32 = arith.constant 0 : i32
    %c0_i32_0 = arith.constant 0 : i32
    %c0_i32_1 = arith.constant 0 : i32
    return %c0_i32, %c0_i32_0 : i32, i32
  }
  func.func @transform_4(%arg0: i32) -> (i32, i32) {
    %c0_i32 = arith.constant 0 : i32
    %c0_i32_0 = arith.constant 0 : i32
    %c0_i32_1 = arith.constant 0 : i32
    return %c0_i32, %c0_i32_0 : i32, i32
  }
  func.func @transform_5(%arg0: i32) -> (i32, i32) {
    %c0_i32 = arith.constant 0 : i32
    %c0_i32_0 = arith.constant 0 : i32
    %c0_i32_1 = arith.constant 0 : i32
    return %c0_i32, %c0_i32_0 : i32, i32
  }
  func.func @transform_6(%arg0: i32) -> (i32, i32) {
    %c0_i32 = arith.constant 0 : i32
    %c0_i32_0 = arith.constant 0 : i32
    %c0_i32_1 = arith.constant 0 : i32
    return %c0_i32, %c0_i32_0 : i32, i32
  }
  func.func @transform_7(%arg0: i32) -> (i32, i32) {
    %c0_i32 = arith.constant 0 : i32
    %c0_i32_0 = arith.constant 0 : i32
    %c0_i32_1 = arith.constant 0 : i32
    return %c0_i32, %c0_i32_0 : i32, i32
  }
  func.func @transform_8(%arg0: i32) -> (i32, i32) {
    %c0_i32 = arith.constant 0 : i32
    %c0_i32_0 = arith.constant 0 : i32
    %c0_i32_1 = arith.constant 0 : i32
    return %c0_i32, %c0_i32_0 : i32, i32
  }
  func.func @transform_9(%arg0: i32) -> (i32, i32) {
    %c0_i32 = arith.constant 0 : i32
    %c0_i32_0 = arith.constant 0 : i32
    %c0_i32_1 = arith.constant 0 : i32
    return %c0_i32, %c0_i32_0 : i32, i32
  }
  func.func @transform_10(%arg0: i32) -> (i32, i32) {
    %c0_i32 = arith.constant 0 : i32
    %c0_i32_0 = arith.constant 0 : i32
    %c0_i32_1 = arith.constant 0 : i32
    return %c0_i32, %c0_i32_0 : i32, i32
  }
  func.func @transform_11(%arg0: i32) -> (i32, i32) {
    %c0_i32 = arith.constant 0 : i32
    %c0_i32_0 = arith.constant 0 : i32
    %c0_i32_1 = arith.constant 0 : i32
    return %c0_i32, %c0_i32_0 : i32, i32
  }
  func.func @transform_12(%arg0: i32) -> (i32, i32) {
    %c0_i32 = arith.constant 0 : i32
    %c0_i32_0 = arith.constant 0 : i32
    %c0_i32_1 = arith.constant 0 : i32
    return %c0_i32, %c0_i32_0 : i32, i32
  }
  func.func @transform_13(%arg0: i32) -> (i32, i32) {
    %c0_i32 = arith.constant 0 : i32
    %c0_i32_0 = arith.constant 0 : i32
    return %arg0, %c0_i32 : i32, i32
  }
}

</mosaic_0001>

<bundles_post_ra>
// kernel: tpu_custom_call.1
= control target key start
LH: loop header
LB: loop body
LE: loop exit
PB: predicated region body
PF: predicated region fallthrough
CT: control target
= control target key end

     0   :  { %18 = vsyncpa [#allocation3], 0  ;;  %s1276_s0 = inlined_call_operand.vmem [shape: f32[8,8], index: 0, kind: input, shape index: {}]   ;;  %s1277_s1 = inlined_call_operand.vmem [shape: f32[8,256], index: 1, kind: input, shape index: {}]   ;;  %s1278_s2 = inlined_call_operand.vmem [shape: f32[1,256], index: 2, kind: input, shape index: {}]   ;;  %s1279_s3 = inlined_call_operand.hbm [shape: f32[256,256], index: 3, kind: input, shape index: {}]   ;;  %s1280_s4 = inlined_call_operand.vmem [shape: f32[1,256], index: 4, kind: input, shape index: {}]   ;;  %s1281_s5 = inlined_call_operand.hbm [shape: f32[256,256], index: 5, kind: input, shape index: {}]   ;;  %s1282_s6 = inlined_call_operand.vmem [shape: f32[1,256], index: 6, kind: input, shape index: {}]   ;;  %s1283_s7 = inlined_call_operand.hbm [shape: f32[256,256], index: 7, kind: input, shape index: {}]   ;;  %s1284_s8 = inlined_call_operand.vmem [shape: f32[1,256], index: 8, kind: input, shape index: {}]   ;;  %s1285_s9 = inlined_call_operand.hbm [shape: f32[256,256], index: 9, kind: input, shape index: {}]   ;;  %s1286_s10 = inlined_call_operand.vmem [shape: f32[1,256], index: 10, kind: input, shape index: {}]   ;;  %s1287_s11 = inlined_call_operand.vmem [shape: f32[256,4], index: 11, kind: input, shape index: {}]   ;;  %s1288_s12 = inlined_call_operand.vmem [shape: f32[1,4], index: 12, kind: input, shape index: {}]   ;;  %s1289_s13 = inlined_call_operand.vmem [shape: f32[8,4], index: 13, kind: output, shape index: {}]  }
   0x1   :  { %19 = vsyncpa [#allocation5], 0 }
   0x2   :  { %20 = vsyncpa [#allocation8], 0  ;;  %s1035_s25 = smov [#allocation4]   ;;  %s1036_s27 = smov [#allocation2]  }
   0x3   :  { %s46_s26 = sshll.u32 %s1035_s25, 4  ;;  %s32_s28 = sshll.u32 %s1036_s27, 4  ;;  %s47_s26 = int_to_ptr.vmem [resolvable:$true] %s46_s26  ;;  %s33_s28 = int_to_ptr.vmem [resolvable:$true] %s32_s28 }
   0x4   :  { %s957_s29 = scalar_lea.vmem %s47_s26, 8192  ;;  %p962_p1 = scmp.lt.s32.totalorder %s47_s26, %s47_s26 }
   0x5   :  { %p958_p0 = scmp.ne.s32.totalorder %s47_s26, %s957_s29  ;;  %p963_p2 = scmp.lt.s32.totalorder %s957_s29, %s957_s29 }
   0x7   :  { %p964_p3 = por %p963_p2, %p962_p1 }
   0x9   :  { %p965_p4 = pnand %p964_p3, %p958_p0 }
   0xb   :  { %968 = shalt.err (!%p965_p4)
}
   0xc   :  { %s1037_s30 = smov 256   ;;  %s1038_s14 = smov 16  }
   0xd   :  { %52 = dma.hbm_to_vmem [thread:$0]  %s1281_s5, 8192, %s47_s26, [#allocation5], %s1037_s30, %s1037_s30, %s1038_s14  }
   0xe   :  { %s977_s17 = scalar_lea.vmem %s33_s28, 8192  ;;  %p982_p6 = scmp.lt.s32.totalorder %s33_s28, %s33_s28 }
   0xf   :  { %p978_p5 = scmp.ne.s32.totalorder %s33_s28, %s977_s17  ;;  %p983_p7 = scmp.lt.s32.totalorder %s977_s17, %s977_s17 }
  0x11   :  { %p984_p8 = por %p983_p7, %p982_p6 }
  0x13   :  { %p985_p9 = pnand %p984_p8, %p978_p5 }
  0x15   :  { %988 = shalt.err (!%p985_p9)
}
  0x16   :  { %38 = dma.hbm_to_vmem [thread:$0]  %s1279_s3, 8192, %s33_s28, [#allocation3], %s1037_s30, %s1037_s30, %s1038_s14  }
  0x17   :  { %s1039_s20 = smov [#allocation6]   ;;  %s1040_s22 = smov [#allocation7]  }
  0x18   :  { %s60_s21 = sshll.u32 %s1039_s20, 4  ;;  %s74_s23 = sshll.u32 %s1040_s22, 4  ;;  %s61_s21 = int_to_ptr.vmem [resolvable:$true] %s60_s21  ;;  %s75_s23 = int_to_ptr.vmem [resolvable:$true] %s74_s23 }
  0x19   :  { %s997_s5 = scalar_lea.vmem %s61_s21, 8192  ;;  %p1002_p11 = scmp.lt.s32.totalorder %s61_s21, %s61_s21 }
  0x1a   :  { %p998_p10 = scmp.ne.s32.totalorder %s61_s21, %s997_s5  ;;  %p1003_p12 = scmp.lt.s32.totalorder %s997_s5, %s997_s5 }
  0x1c   :  { %p1004_p13 = por %p1003_p12, %p1002_p11 }
  0x1e   :  { %p1005_p0 = pnand %p1004_p13, %p998_p10 }
  0x20   :  { %1008 = shalt.err (!%p1005_p0)
}
  0x21   :  { %66 = dma.hbm_to_vmem [thread:$0]  %s1283_s7, 8192, %s61_s21, [#allocation5], %s1037_s30, %s1037_s30, %s1038_s14  }
  0x22   :  { %s1017_s3 = scalar_lea.vmem %s75_s23, 8192  ;;  %p1022_p2 = scmp.lt.s32.totalorder %s75_s23, %s75_s23 }
  0x23   :  { %p1018_p1 = scmp.ne.s32.totalorder %s75_s23, %s1017_s3  ;;  %p1023_p3 = scmp.lt.s32.totalorder %s1017_s3, %s1017_s3 }
  0x25   :  { %p1024_p4 = por %p1023_p3, %p1022_p2 }
  0x27   :  { %p1025_p5 = pnand %p1024_p4, %p1018_p1 }
  0x29   :  { %1028 = shalt.err (!%p1025_p5)
}
  0x2a   :  { %80 = dma.hbm_to_vmem [thread:$0]  %s1285_s9, 8192, %s75_s23, [#allocation8], %s1037_s30, %s1037_s30, %s1038_s14  }
  0x2b   :  { %1029 = dma.done.wait [#allocation3], 8192  }
  0x2c   :  { %1030 = vsyncadd [#allocation3], 4294959104 }
  0x2d   :  { %1031 = dma.done.wait [#allocation5], 16384  }
  0x2e   :  { %1032 = vsyncadd [#allocation5], 4294950912 }
  0x2f   :  { %1033 = dma.done.wait [#allocation8], 8192  }
  0x30   :  { %1034 = vsyncadd [#allocation8], 4294959104  ;;  %v1041_v0 = vmov 0.0   ;;  %v101_v1 = vld [vmem:[%s1277_s1 + $0x8] sm:$0xff]  ;;  %v100_v2 = vld [vmem:[%s1277_s1] sm:$0xff]  ;;  %vm114_vm0 = vcmask 64512  }
  0x31   :  { %182 = vmatprep.mubr.f32.mxu0 %v1041_v0  ;;  %v99_v3 = vld [vmem:[%s1276_s0] sm:$0xff]  ;;  %148 = vmatprep.subr.mxu0 %v101_v1  ;;  %v222_v4 = vld [vmem:[#allocation2 + $0xf8] sm:$0xff]  ;;  %v221_v5 = vld [vmem:[#allocation2 + $0xf0] sm:$0xff]  ;;  %vm896_vm1 = vcmask 31744  }
  0x32   :  { %v220_v6 = vld [vmem:[#allocation2 + $0xe8] sm:$0xff]  ;;  %149 = vmatpush1.msra.mxu0 %v100_v2  ;;  %267 = vmatprep.subr.mxu1 %v222_v4  ;;  %v219_v7 = vld [vmem:[#allocation2 + $0xe0] sm:$0xff]  ;;  %v218_v8 = vld [vmem:[#allocation2 + $0xd8] sm:$0xff] }
  0x33   :  { %905 = vmatmul.mubr.msk.f32.vlgmr.msra.gmra.mxu0 %vm114_vm0, %v99_v3  ;;  %268 = vmatpush1.msra.mxu1 %v221_v5  ;;  %v217_v9 = vld [vmem:[#allocation2 + $0xd0] sm:$0xff]  ;;  %v216_v10 = vld [vmem:[#allocation2 + $0xc8] sm:$0xff]  ;;  %v215_v11 = vld [vmem:[#allocation2 + $0xc0] sm:$0xff] }
  0x34   :  { %269 = vmatprep.subr.mxu1 %v220_v6  ;;  %v214_v12 = vld [vmem:[#allocation2 + $0xb8] sm:$0xff]  ;;  %v213_v13 = vld [vmem:[#allocation2 + $0xb0] sm:$0xff]  ;;  %v212_v14 = vld [vmem:[#allocation2 + $0xa8] sm:$0xff] }
  0x35   :  { %270 = vmatpush1.msra.mxu1 %v219_v7  ;;  %v211_v15 = vld [vmem:[#allocation2 + $0xa0] sm:$0xff]  ;;  %v210_v16 = vld [vmem:[#allocation2 + $0x98] sm:$0xff]  ;;  %v209_v17 = vld [vmem:[#allocation2 + $0x90] sm:$0xff] }
  0x36   :  { %271 = vmatprep.subr.mxu1 %v218_v8  ;;  %v208_v18 = vld [vmem:[#allocation2 + $0x88] sm:$0xff]  ;;  %v207_v19 = vld [vmem:[#allocation2 + $0x80] sm:$0xff]  ;;  %v206_v20 = vld [vmem:[#allocation2 + $0x78] sm:$0xff] }
  0x37   :  { %272 = vmatpush1.msra.mxu1 %v217_v9  ;;  %v205_v21 = vld [vmem:[#allocation2 + $0x70] sm:$0xff]  ;;  %v204_v22 = vld [vmem:[#allocation2 + $0x68] sm:$0xff]  ;;  %v203_v23 = vld [vmem:[#allocation2 + $0x60] sm:$0xff] }
  0x38   :  { %273 = vmatprep.subr.mxu1 %v216_v10  ;;  %v202_v24 = vld [vmem:[#allocation2 + $0x58] sm:$0xff]  ;;  %v201_v25 = vld [vmem:[#allocation2 + $0x50] sm:$0xff]  ;;  %v200_v26 = vld [vmem:[#allocation2 + $0x48] sm:$0xff] }
  0x39   :  { %274 = vmatpush1.msra.mxu1 %v215_v11  ;;  %v199_v27 = vld [vmem:[#allocation2 + $0x40] sm:$0xff]  ;;  %v198_v28 = vld [vmem:[#allocation2 + $0x38] sm:$0xff]  ;;  %v197_v29 = vld [vmem:[#allocation2 + $0x30] sm:$0xff] }
  0x3a   :  { %275 = vmatprep.subr.mxu1 %v214_v12  ;;  %v196_v30 = vld [vmem:[#allocation2 + $0x28] sm:$0xff]  ;;  %v195_v31 = vld [vmem:[#allocation2 + $0x20] sm:$0xff]  ;;  %v194_v32 = vld [vmem:[#allocation2 + $0x18] sm:$0xff] }
  0x3b   :  { %276 = vmatpush1.msra.mxu1 %v213_v13  ;;  %v193_v33 = vld [vmem:[#allocation2 + $0x10] sm:$0xff]  ;;  %v192_v34 = vld [vmem:[#allocation2 + $0x8] sm:$0xff]  ;;  %v191_v35 = vld [vmem:[#allocation2] sm:$0xff] }
  0x3c   :  { %277 = vmatprep.subr.mxu1 %v212_v14  ;;  %v254_v36 = vld [vmem:[#allocation2 + $0x1f8] sm:$0xff]  ;;  %v253_v37 = vld [vmem:[#allocation2 + $0x1f0] sm:$0xff]  ;;  %v252_v38 = vld [vmem:[#allocation2 + $0x1e8] sm:$0xff] }
  0x3d   :  { %278 = vmatpush1.msra.mxu1 %v211_v15  ;;  %v251_v39 = vld [vmem:[#allocation2 + $0x1e0] sm:$0xff]  ;;  %v250_v40 = vld [vmem:[#allocation2 + $0x1d8] sm:$0xff]  ;;  %v249_v41 = vld [vmem:[#allocation2 + $0x1d0] sm:$0xff] }
  0x3e   :  { %279 = vmatprep.subr.mxu1 %v210_v16  ;;  %v248_v42 = vld [vmem:[#allocation2 + $0x1c8] sm:$0xff]  ;;  %v247_v43 = vld [vmem:[#allocation2 + $0x1c0] sm:$0xff]  ;;  %v246_v44 = vld [vmem:[#allocation2 + $0x1b8] sm:$0xff] }
  0x3f   :  { %280 = vmatpush1.msra.mxu1 %v209_v17  ;;  %v245_v45 = vld [vmem:[#allocation2 + $0x1b0] sm:$0xff]  ;;  %v244_v46 = vld [vmem:[#allocation2 + $0x1a8] sm:$0xff]  ;;  %v243_v47 = vld [vmem:[#allocation2 + $0x1a0] sm:$0xff] }
  0x40   :  { %281 = vmatprep.subr.mxu1 %v208_v18  ;;  %v242_v48 = vld [vmem:[#allocation2 + $0x198] sm:$0xff]  ;;  %v241_v49 = vld [vmem:[#allocation2 + $0x190] sm:$0xff]  ;;  %v240_v50 = vld [vmem:[#allocation2 + $0x188] sm:$0xff] }
  0x41   :  { %282 = vmatpush1.msra.mxu1 %v207_v19  ;;  %v239_v51 = vld [vmem:[#allocation2 + $0x180] sm:$0xff]  ;;  %v238_v52 = vld [vmem:[#allocation2 + $0x178] sm:$0xff]  ;;  %v237_v53 = vld [vmem:[#allocation2 + $0x170] sm:$0xff] }
  0x42   :  { %283 = vmatprep.subr.mxu1 %v206_v20  ;;  %v236_v54 = vld [vmem:[#allocation2 + $0x168] sm:$0xff]  ;;  %v235_v55 = vld [vmem:[#allocation2 + $0x160] sm:$0xff]  ;;  %v234_v56 = vld [vmem:[#allocation2 + $0x158] sm:$0xff] }
  0x43   :  { %284 = vmatpush1.msra.mxu1 %v205_v21  ;;  %v233_v57 = vld [vmem:[#allocation2 + $0x150] sm:$0xff]  ;;  %v232_v58 = vld [vmem:[#allocation2 + $0x148] sm:$0xff]  ;;  %v231_v59 = vld [vmem:[#allocation2 + $0x140] sm:$0xff] }
  0x44   :  { %285 = vmatprep.subr.mxu1 %v204_v22  ;;  %v230_v60 = vld [vmem:[#allocation2 + $0x138] sm:$0xff]  ;;  %v229_v61 = vld [vmem:[#allocation2 + $0x130] sm:$0xff]  ;;  %v228_v62 = vld [vmem:[#allocation2 + $0x128] sm:$0xff] }
  0x45   :  { %286 = vmatpush1.msra.mxu1 %v203_v23  ;;  %v227_v63 = vld [vmem:[#allocation2 + $0x120] sm:$0xff]  ;;  %v226_v0 = vld [vmem:[#allocation2 + $0x118] sm:$0xff]  ;;  %v225_v1 = vld [vmem:[#allocation2 + $0x110] sm:$0xff] }
  0x46   :  { %287 = vmatprep.subr.mxu1 %v202_v24  ;;  %v224_v2 = vld [vmem:[#allocation2 + $0x108] sm:$0xff]  ;;  %v223_v3 = vld [vmem:[#allocation2 + $0x100] sm:$0xff]  ;;  %v371_v4 = vld [vmem:[#allocation4 + $0xf8] sm:$0xff] }
  0x47   :  { %288 = vmatpush1.msra.mxu1 %v201_v25  ;;  %v370_v5 = vld [vmem:[#allocation4 + $0xf0] sm:$0xff]  ;;  %v369_v6 = vld [vmem:[#allocation4 + $0xe8] sm:$0xff]  ;;  %416 = vmatprep.subr.mxu0 %v371_v4  ;;  %v368_v7 = vld [vmem:[#allocation4 + $0xe0] sm:$0xff] }
  0x48   :  { %289 = vmatprep.subr.mxu1 %v200_v26  ;;  %417 = vmatpush1.msra.mxu0 %v370_v5  ;;  %v367_v8 = vld [vmem:[#allocation4 + $0xd8] sm:$0xff]  ;;  %v366_v9 = vld [vmem:[#allocation4 + $0xd0] sm:$0xff]  ;;  %v365_v10 = vld [vmem:[#allocation4 + $0xc8] sm:$0xff] }
  0x49   :  { %290 = vmatpush1.msra.mxu1 %v199_v27  ;;  %418 = vmatprep.subr.mxu0 %v369_v6  ;;  %v364_v11 = vld [vmem:[#allocation4 + $0xc0] sm:$0xff]  ;;  %v363_v12 = vld [vmem:[#allocation4 + $0xb8] sm:$0xff]  ;;  %v362_v13 = vld [vmem:[#allocation4 + $0xb0] sm:$0xff] }
  0x4a   :  { %291 = vmatprep.subr.mxu1 %v198_v28  ;;  %419 = vmatpush1.msra.mxu0 %v368_v7  ;;  %v361_v14 = vld [vmem:[#allocation4 + $0xa8] sm:$0xff]  ;;  %v360_v15 = vld [vmem:[#allocation4 + $0xa0] sm:$0xff]  ;;  %v359_v16 = vld [vmem:[#allocation4 + $0x98] sm:$0xff] }
  0x4b   :  { %292 = vmatpush1.msra.mxu1 %v197_v29  ;;  %420 = vmatprep.subr.mxu0 %v367_v8  ;;  %v358_v17 = vld [vmem:[#allocation4 + $0x90] sm:$0xff]  ;;  %v357_v18 = vld [vmem:[#allocation4 + $0x88] sm:$0xff]  ;;  %v356_v19 = vld [vmem:[#allocation4 + $0x80] sm:$0xff] }
  0x4c   :  { %293 = vmatprep.subr.mxu1 %v196_v30  ;;  %421 = vmatpush1.msra.mxu0 %v366_v9  ;;  %v355_v20 = vld [vmem:[#allocation4 + $0x78] sm:$0xff]  ;;  %v354_v21 = vld [vmem:[#allocation4 + $0x70] sm:$0xff]  ;;  %v353_v22 = vld [vmem:[#allocation4 + $0x68] sm:$0xff] }
  0x4d   :  { %294 = vmatpush1.msra.mxu1 %v195_v31  ;;  %422 = vmatprep.subr.mxu0 %v365_v10  ;;  %v352_v23 = vld [vmem:[#allocation4 + $0x60] sm:$0xff]  ;;  %v351_v24 = vld [vmem:[#allocation4 + $0x58] sm:$0xff]  ;;  %v350_v25 = vld [vmem:[#allocation4 + $0x50] sm:$0xff] }
  0x4e   :  { %295 = vmatprep.subr.mxu1 %v194_v32  ;;  %423 = vmatpush1.msra.mxu0 %v364_v11  ;;  %v349_v26 = vld [vmem:[#allocation4 + $0x48] sm:$0xff]  ;;  %v348_v27 = vld [vmem:[#allocation4 + $0x40] sm:$0xff]  ;;  %v347_v28 = vld [vmem:[#allocation4 + $0x38] sm:$0xff] }
  0x4f   :  { %296 = vmatpush1.msra.mxu1 %v193_v33  ;;  %424 = vmatprep.subr.mxu0 %v363_v12  ;;  %v346_v29 = vld [vmem:[#allocation4 + $0x30] sm:$0xff]  ;;  %v345_v30 = vld [vmem:[#allocation4 + $0x28] sm:$0xff]  ;;  %v344_v31 = vld [vmem:[#allocation4 + $0x20] sm:$0xff] }
  0x50   :  { %297 = vmatprep.subr.mxu1 %v192_v34  ;;  %425 = vmatpush1.msra.mxu0 %v362_v13  ;;  %v343_v32 = vld [vmem:[#allocation4 + $0x18] sm:$0xff]  ;;  %v342_v33 = vld [vmem:[#allocation4 + $0x10] sm:$0xff]  ;;  %v341_v34 = vld [vmem:[#allocation4 + $0x8] sm:$0xff] }
  0x51   :  { %298 = vmatpush1.msra.mxu1 %v191_v35  ;;  %426 = vmatprep.subr.mxu0 %v361_v14  ;;  %v340_v35 = vld [vmem:[#allocation4] sm:$0xff]  ;;  %v379_v9 = vld [vmem:[#allocation4 + $0x138] sm:$0xff]  ;;  %v378_v10 = vld [vmem:[#allocation4 + $0x130] sm:$0xff] }
  0x52   :  { %299 = vmatprep.subr.mxu1 %v254_v36  ;;  %427 = vmatpush1.msra.mxu0 %v360_v15  ;;  %v403_v36 = vld [vmem:[#allocation4 + $0x1f8] sm:$0xff]  ;;  %v377_v11 = vld [vmem:[#allocation4 + $0x128] sm:$0xff]  ;;  %v376_v12 = vld [vmem:[#allocation4 + $0x120] sm:$0xff] }
  0x53   :  { %300 = vmatpush2.msra.mxu1 %v253_v37  ;;  %428 = vmatprep.subr.mxu0 %v359_v16  ;;  %v402_v37 = vld [vmem:[#allocation4 + $0x1f0] sm:$0xff]  ;;  %v375_v13 = vld [vmem:[#allocation4 + $0x118] sm:$0xff]  ;;  %v373_v15 = vld [vmem:[#allocation4 + $0x108] sm:$0xff] }
  0x54   :  { %301 = vmatprep.subr.mxu1 %v252_v38  ;;  %429 = vmatpush1.msra.mxu0 %v358_v17  ;;  %v401_v38 = vld [vmem:[#allocation4 + $0x1e8] sm:$0xff]  ;;  %v374_v14 = vld [vmem:[#allocation4 + $0x110] sm:$0xff]  ;;  %v372_v16 = vld [vmem:[#allocation4 + $0x100] sm:$0xff] }
  0x55   :  { %302 = vmatpush2.msra.mxu1 %v251_v39  ;;  %430 = vmatprep.subr.mxu0 %v357_v18  ;;  %v400_v39 = vld [vmem:[#allocation4 + $0x1e0] sm:$0xff]  ;;  %v520_v17 = vld [vmem:[#allocation6 + $0xf8] sm:$0xff]  ;;  %v519_v18 = vld [vmem:[#allocation6 + $0xf0] sm:$0xff] }
  0x56   :  { %303 = vmatprep.subr.mxu1 %v250_v40  ;;  %431 = vmatpush1.msra.mxu0 %v356_v19  ;;  %v399_v40 = vld [vmem:[#allocation4 + $0x1d8] sm:$0xff]  ;;  %v518_v19 = vld [vmem:[#allocation6 + $0xe8] sm:$0xff] }
  0x57   :  { %304 = vmatpush2.msra.mxu1 %v249_v41  ;;  %432 = vmatprep.subr.mxu0 %v355_v20  ;;  %v398_v41 = vld [vmem:[#allocation4 + $0x1d0] sm:$0xff]  ;;  %v517_v20 = vld [vmem:[#allocation6 + $0xe0] sm:$0xff] }
  0x58   :  { %305 = vmatprep.subr.mxu1 %v248_v42  ;;  %433 = vmatpush1.msra.mxu0 %v354_v21  ;;  %v397_v42 = vld [vmem:[#allocation4 + $0x1c8] sm:$0xff]  ;;  %v516_v21 = vld [vmem:[#allocation6 + $0xd8] sm:$0xff] }
  0x59   :  { %306 = vmatpush2.msra.mxu1 %v247_v43  ;;  %434 = vmatprep.subr.mxu0 %v353_v22  ;;  %v396_v43 = vld [vmem:[#allocation4 + $0x1c0] sm:$0xff]  ;;  %v515_v22 = vld [vmem:[#allocation6 + $0xd0] sm:$0xff] }
  0x5a   :  { %307 = vmatprep.subr.mxu1 %v246_v44  ;;  %435 = vmatpush1.msra.mxu0 %v352_v23  ;;  %v395_v44 = vld [vmem:[#allocation4 + $0x1b8] sm:$0xff]  ;;  %v514_v23 = vld [vmem:[#allocation6 + $0xc8] sm:$0xff] }
  0x5b   :  { %308 = vmatpush2.msra.mxu1 %v245_v45  ;;  %436 = vmatprep.subr.mxu0 %v351_v24  ;;  %v394_v45 = vld [vmem:[#allocation4 + $0x1b0] sm:$0xff]  ;;  %v513_v24 = vld [vmem:[#allocation6 + $0xc0] sm:$0xff] }
  0x5c   :  { %309 = vmatprep.subr.mxu1 %v244_v46  ;;  %437 = vmatpush1.msra.mxu0 %v350_v25  ;;  %v393_v46 = vld [vmem:[#allocation4 + $0x1a8] sm:$0xff]  ;;  %v512_v25 = vld [vmem:[#allocation6 + $0xb8] sm:$0xff] }
  0x5d   :  { %310 = vmatpush2.msra.mxu1 %v243_v47  ;;  %438 = vmatprep.subr.mxu0 %v349_v26  ;;  %v392_v47 = vld [vmem:[#allocation4 + $0x1a0] sm:$0xff]  ;;  %v511_v26 = vld [vmem:[#allocation6 + $0xb0] sm:$0xff] }
  0x5e   :  { %311 = vmatprep.subr.mxu1 %v242_v48  ;;  %439 = vmatpush1.msra.mxu0 %v348_v27  ;;  %v391_v48 = vld [vmem:[#allocation4 + $0x198] sm:$0xff]  ;;  %v510_v27 = vld [vmem:[#allocation6 + $0xa8] sm:$0xff] }
  0x5f   :  { %312 = vmatpush2.msra.mxu1 %v241_v49  ;;  %440 = vmatprep.subr.mxu0 %v347_v28  ;;  %v390_v49 = vld [vmem:[#allocation4 + $0x190] sm:$0xff]  ;;  %v509_v28 = vld [vmem:[#allocation6 + $0xa0] sm:$0xff] }
  0x60   :  { %313 = vmatprep.subr.mxu1 %v240_v50  ;;  %441 = vmatpush1.msra.mxu0 %v346_v29  ;;  %v389_v50 = vld [vmem:[#allocation4 + $0x188] sm:$0xff]  ;;  %v508_v29 = vld [vmem:[#allocation6 + $0x98] sm:$0xff] }
  0x61   :  { %314 = vmatpush2.msra.mxu1 %v239_v51  ;;  %442 = vmatprep.subr.mxu0 %v345_v30  ;;  %v388_v51 = vld [vmem:[#allocation4 + $0x180] sm:$0xff]  ;;  %v507_v30 = vld [vmem:[#allocation6 + $0x90] sm:$0xff] }
  0x62   :  { %315 = vmatprep.subr.mxu1 %v238_v52  ;;  %443 = vmatpush1.msra.mxu0 %v344_v31  ;;  %v387_v52 = vld [vmem:[#allocation4 + $0x178] sm:$0xff]  ;;  %v506_v31 = vld [vmem:[#allocation6 + $0x88] sm:$0xff] }
  0x63   :  { %316 = vmatpush2.msra.mxu1 %v237_v53  ;;  %444 = vmatprep.subr.mxu0 %v343_v32  ;;  %v386_v53 = vld [vmem:[#allocation4 + $0x170] sm:$0xff]  ;;  %v505_v32 = vld [vmem:[#allocation6 + $0x80] sm:$0xff] }
  0x64   :  { %317 = vmatprep.subr.mxu1 %v236_v54  ;;  %445 = vmatpush1.msra.mxu0 %v342_v33  ;;  %v385_v54 = vld [vmem:[#allocation4 + $0x168] sm:$0xff]  ;;  %v504_v33 = vld [vmem:[#allocation6 + $0x78] sm:$0xff] }
  0x65   :  { %318 = vmatpush2.msra.mxu1 %v235_v55  ;;  %446 = vmatprep.subr.mxu0 %v341_v34  ;;  %v384_v55 = vld [vmem:[#allocation4 + $0x160] sm:$0xff]  ;;  %v503_v34 = vld [vmem:[#allocation6 + $0x70] sm:$0xff] }
  0x66   :  { %319 = vmatprep.subr.mxu1 %v234_v56  ;;  %447 = vmatpush1.msra.mxu0 %v340_v35  ;;  %v383_v56 = vld [vmem:[#allocation4 + $0x158] sm:$0xff]  ;;  %v502_v35 = vld [vmem:[#allocation6 + $0x68] sm:$0xff] }
  0x67   :  { %320 = vmatpush2.msra.mxu1 %v233_v57  ;;  %448 = vmatprep.subr.mxu0 %v403_v36  ;;  %v382_v57 = vld [vmem:[#allocation4 + $0x150] sm:$0xff]  ;;  %v501_v36 = vld [vmem:[#allocation6 + $0x60] sm:$0xff] }
  0x68   :  { %321 = vmatprep.subr.mxu1 %v232_v58  ;;  %449 = vmatpush2.msra.mxu0 %v402_v37  ;;  %v381_v58 = vld [vmem:[#allocation4 + $0x148] sm:$0xff]  ;;  %v500_v37 = vld [vmem:[#allocation6 + $0x58] sm:$0xff] }
  0x69   :  { %322 = vmatpush2.msra.mxu1 %v231_v59  ;;  %450 = vmatprep.subr.mxu0 %v401_v38  ;;  %v380_v59 = vld [vmem:[#allocation4 + $0x140] sm:$0xff]  ;;  %v499_v38 = vld [vmem:[#allocation6 + $0x50] sm:$0xff] }
  0x6a   :  { %323 = vmatprep.subr.mxu1 %v230_v60  ;;  %451 = vmatpush2.msra.mxu0 %v400_v39  ;;  %v104_v60 = vlaneseq  ;;  %v498_v39 = vld [vmem:[#allocation6 + $0x48] sm:$0xff] }
  0x6b   :  { %324 = vmatpush2.msra.mxu1 %v229_v61  ;;  %452 = vmatprep.subr.mxu0 %v399_v40  ;;  %v497_v40 = vld [vmem:[#allocation6 + $0x40] sm:$0xff] }
  0x6c   :  { %325 = vmatprep.subr.mxu1 %v228_v62  ;;  %453 = vmatpush2.msra.mxu0 %v398_v41  ;;  %v105_v61 = vshrl.u32 %v104_v60, 7  ;;  %v496_v41 = vld [vmem:[#allocation6 + $0x38] sm:$0xff]  ;;  %v541_v60 = vld [vmem:[#allocation6 + $0x1a0] sm:$0xff] }
  0x6d   :  { %326 = vmatpush2.msra.mxu1 %v227_v63  ;;  %454 = vmatprep.subr.mxu0 %v397_v42  ;;  %v102_v63 = vld [vmem:[%s1278_s2] sm:$0x3]  ;;  %v495_v42 = vld [vmem:[#allocation6 + $0x30] sm:$0xff] }
  0x6e   :  { %327 = vmatprep.subr.mxu1 %v226_v0  ;;  %455 = vmatpush2.msra.mxu0 %v396_v43  ;;  %v1145_v62 = vsub.s32 0, %v105_v61  ;;  %v1150_v0 = vsub.s32 1, %v105_v61  ;;  %v494_v43 = vld [vmem:[#allocation6 + $0x28] sm:$0xff]  ;;  %v540_v61 = vld [vmem:[#allocation6 + $0x198] sm:$0xff] }
  0x6f   :  { %328 = vmatpush2.msra.mxu1 %v225_v1  ;;  %456 = vmatprep.subr.mxu0 %v395_v44  ;;  %v493_v44 = vld [vmem:[#allocation6 + $0x20] sm:$0xff] }
  0x70   :  { %329 = vmatprep.subr.mxu1 %v224_v2  ;;  %457 = vmatpush2.msra.mxu0 %v394_v45  ;;  %v107_v1 = vrot.slane %v102_v63, %v1145_v62  ;;  %v111_v2 = vrot.slane %v102_v63, %v1150_v0  ;;  %v492_v45 = vld [vmem:[#allocation6 + $0x18] sm:$0xff]  ;;  %v539_v63 = vld [vmem:[#allocation6 + $0x190] sm:$0xff] }
  0x71   :  { %330 = vmatpush2.msra.mxu1 %v223_v3  ;;  %458 = vmatprep.subr.mxu0 %v393_v46  ;;  %v491_v46 = vld [vmem:[#allocation6 + $0x10] sm:$0xff] }
  0x72   :  { %459 = vmatpush2.msra.mxu0 %v392_v47  ;;  %565 = vmatprep.subr.mxu1 %v520_v17  ;;  %v490_v47 = vld [vmem:[#allocation6 + $0x8] sm:$0xff] }
  0x73   :  { %460 = vmatprep.subr.mxu0 %v391_v48  ;;  %v489_v48 = vld [vmem:[#allocation6] sm:$0xff] }
  0x74   :  { %461 = vmatpush2.msra.mxu0 %v390_v49  ;;  %v552_v49 = vld [vmem:[#allocation6 + $0x1f8] sm:$0xff] }
  0x75   :  { %462 = vmatprep.subr.mxu0 %v389_v50  ;;  %v551_v50 = vld [vmem:[#allocation6 + $0x1f0] sm:$0xff] }
  0x76   :  { %463 = vmatpush2.msra.mxu0 %v388_v51  ;;  %v550_v51 = vld [vmem:[#allocation6 + $0x1e8] sm:$0xff] }
  0x77   :  { %464 = vmatprep.subr.mxu0 %v387_v52  ;;  %v549_v52 = vld [vmem:[#allocation6 + $0x1e0] sm:$0xff] }
  0x78   :  { %465 = vmatpush2.msra.mxu0 %v386_v53  ;;  %v548_v53 = vld [vmem:[#allocation6 + $0x1d8] sm:$0xff] }
  0x79   :  { %466 = vmatprep.subr.mxu0 %v385_v54  ;;  %v547_v54 = vld [vmem:[#allocation6 + $0x1d0] sm:$0xff] }
  0x7a   :  { %467 = vmatpush2.msra.mxu0 %v384_v55  ;;  %v546_v55 = vld [vmem:[#allocation6 + $0x1c8] sm:$0xff] }
  0x7b   :  { %468 = vmatprep.subr.mxu0 %v383_v56  ;;  %v545_v56 = vld [vmem:[#allocation6 + $0x1c0] sm:$0xff] }
  0x7c   :  { %469 = vmatpush2.msra.mxu0 %v382_v57  ;;  %v544_v57 = vld [vmem:[#allocation6 + $0x1b8] sm:$0xff] }
  0x7d   :  { %470 = vmatprep.subr.mxu0 %v381_v58  ;;  %v543_v58 = vld [vmem:[#allocation6 + $0x1b0] sm:$0xff] }
  0x7e   :  { %471 = vmatpush2.msra.mxu0 %v380_v59  ;;  %v542_v59 = vld [vmem:[#allocation6 + $0x1a8] sm:$0xff] }
  0x7f   :  { %472 = vmatprep.subr.mxu0 %v379_v9  ;;  %v530_v9 = vld [vmem:[#allocation6 + $0x148] sm:$0xff] }
  0x80   :  { %473 = vmatpush2.msra.mxu0 %v378_v10  ;;  %v529_v10 = vld [vmem:[#allocation6 + $0x140] sm:$0xff] }
  0x81   :  { %474 = vmatprep.subr.mxu0 %v377_v11  ;;  %v255_v11 = vld [vmem:[%s1280_s4] sm:$0x3] }
  0x82   :  { %475 = vmatpush2.msra.mxu0 %v376_v12  ;;  %v260_v12 = vrot.slane %v255_v11, %v1145_v62 }
  0x83   :  { %476 = vmatprep.subr.mxu0 %v375_v13  ;;  %v264_v13 = vrot.slane %v255_v11, %v1150_v0  ;;  %v688_v11 = vld [vmem:[#allocation7 + $0x190] sm:$0xff] }
  0x84   :  { %477 = vmatpush2.msra.mxu0 %v374_v14 }
  0x85   :  { %478 = vmatprep.subr.mxu0 %v373_v15 }
  0x86   :  { %479 = vmatpush2.msra.mxu0 %v372_v16 }
  0xf3   :  { %v184_v3 = vpop.f32.mrf.mxu0 }
  0xf4   :  { %v185_v4 = vadd.f32 %v184_v3, %v107_v1  ;;  %v538_v1 = vld [vmem:[#allocation6 + $0x188] sm:$0xff]  ;;  %v536_v3 = vld [vmem:[#allocation6 + $0x178] sm:$0xff] }
  0xf5   :  { %v186_v5 = vpop.f32.mrf.mxu0 }
  0xf6   :  { %v187_v6 = vadd.f32 %v186_v5, %v111_v2  ;;  %v189_v8 = vmax.f32 %v185_v4, 0.0  ;;  %v537_v2 = vld [vmem:[#allocation6 + $0x180] sm:$0xff]  ;;  %v535_v4 = vld [vmem:[#allocation6 + $0x170] sm:$0xff]  ;;  %v534_v5 = vld [vmem:[#allocation6 + $0x168] sm:$0xff] }
  0xf8   :  { %v190_v7 = vmax.f32 %v187_v6, 0.0  ;;  %v533_v6 = vld [vmem:[#allocation6 + $0x160] sm:$0xff] }
  0xfa   :  { %331 = vmatprep.mubr.f32.mxu1 %v190_v7  ;;  %v532_v7 = vld [vmem:[#allocation6 + $0x158] sm:$0xff] }
  0xfb   :  { %332 = vmatmul.mubr.f32.vlgmr.msra.gmra.mxu1 %v189_v8  ;;  %v531_v8 = vld [vmem:[#allocation6 + $0x150] sm:$0xff] }
  0xfc   :  { %566 = vmatpush1.msra.mxu1 %v519_v18 }
  0xfd   :  { %567 = vmatprep.subr.mxu1 %v518_v19 }
  0xfe   :  { %568 = vmatpush1.msra.mxu1 %v517_v20  ;;  %v528_v20 = vld [vmem:[#allocation6 + $0x138] sm:$0xff] }
  0xff   :  { %569 = vmatprep.subr.mxu1 %v516_v21  ;;  %v527_v21 = vld [vmem:[#allocation6 + $0x130] sm:$0xff] }
 0x100   :  { %570 = vmatpush1.msra.mxu1 %v515_v22  ;;  %v526_v22 = vld [vmem:[#allocation6 + $0x128] sm:$0xff] }
 0x101   :  { %571 = vmatprep.subr.mxu1 %v514_v23  ;;  %v525_v23 = vld [vmem:[#allocation6 + $0x120] sm:$0xff] }
 0x102   :  { %572 = vmatpush1.msra.mxu1 %v513_v24  ;;  %v524_v24 = vld [vmem:[#allocation6 + $0x118] sm:$0xff] }
 0x103   :  { %573 = vmatprep.subr.mxu1 %v512_v25  ;;  %v523_v25 = vld [vmem:[#allocation6 + $0x110] sm:$0xff] }
 0x104   :  { %574 = vmatpush1.msra.mxu1 %v511_v26  ;;  %v522_v26 = vld [vmem:[#allocation6 + $0x108] sm:$0xff] }
 0x105   :  { %575 = vmatprep.subr.mxu1 %v510_v27  ;;  %v521_v27 = vld [vmem:[#allocation6 + $0x100] sm:$0xff] }
 0x106   :  { %576 = vmatpush1.msra.mxu1 %v509_v28  ;;  %v669_v28 = vld [vmem:[#allocation7 + $0xf8] sm:$0xff] }
 0x107   :  { %577 = vmatprep.subr.mxu1 %v508_v29  ;;  %v668_v29 = vld [vmem:[#allocation7 + $0xf0] sm:$0xff]  ;;  %714 = vmatprep.subr.mxu0 %v669_v28 }
 0x108   :  { %578 = vmatpush1.msra.mxu1 %v507_v30  ;;  %v667_v30 = vld [vmem:[#allocation7 + $0xe8] sm:$0xff] }
 0x109   :  { %579 = vmatprep.subr.mxu1 %v506_v31  ;;  %v666_v31 = vld [vmem:[#allocation7 + $0xe0] sm:$0xff] }
 0x10a   :  { %580 = vmatpush1.msra.mxu1 %v505_v32  ;;  %v665_v32 = vld [vmem:[#allocation7 + $0xd8] sm:$0xff] }
 0x10b   :  { %581 = vmatprep.subr.mxu1 %v504_v33  ;;  %v664_v33 = vld [vmem:[#allocation7 + $0xd0] sm:$0xff] }
 0x10c   :  { %582 = vmatpush1.msra.mxu1 %v503_v34  ;;  %v663_v34 = vld [vmem:[#allocation7 + $0xc8] sm:$0xff] }
 0x10d   :  { %583 = vmatprep.subr.mxu1 %v502_v35  ;;  %v662_v35 = vld [vmem:[#allocation7 + $0xc0] sm:$0xff] }
 0x10e   :  { %584 = vmatpush1.msra.mxu1 %v501_v36  ;;  %v661_v36 = vld [vmem:[#allocation7 + $0xb8] sm:$0xff] }
 0x10f   :  { %585 = vmatprep.subr.mxu1 %v500_v37  ;;  %v660_v37 = vld [vmem:[#allocation7 + $0xb0] sm:$0xff] }
 0x110   :  { %586 = vmatpush1.msra.mxu1 %v499_v38  ;;  %v659_v38 = vld [vmem:[#allocation7 + $0xa8] sm:$0xff] }
 0x111   :  { %587 = vmatprep.subr.mxu1 %v498_v39  ;;  %v658_v39 = vld [vmem:[#allocation7 + $0xa0] sm:$0xff] }
 0x112   :  { %588 = vmatpush1.msra.mxu1 %v497_v40  ;;  %v657_v40 = vld [vmem:[#allocation7 + $0x98] sm:$0xff] }
 0x113   :  { %589 = vmatprep.subr.mxu1 %v496_v41  ;;  %v656_v41 = vld [vmem:[#allocation7 + $0x90] sm:$0xff] }
 0x114   :  { %590 = vmatpush1.msra.mxu1 %v495_v42  ;;  %v655_v42 = vld [vmem:[#allocation7 + $0x88] sm:$0xff] }
 0x115   :  { %591 = vmatprep.subr.mxu1 %v494_v43  ;;  %v654_v43 = vld [vmem:[#allocation7 + $0x80] sm:$0xff] }
 0x116   :  { %592 = vmatpush1.msra.mxu1 %v493_v44  ;;  %v653_v44 = vld [vmem:[#allocation7 + $0x78] sm:$0xff] }
 0x117   :  { %593 = vmatprep.subr.mxu1 %v492_v45  ;;  %v652_v45 = vld [vmem:[#allocation7 + $0x70] sm:$0xff] }
 0x118   :  { %594 = vmatpush1.msra.mxu1 %v491_v46  ;;  %v651_v46 = vld [vmem:[#allocation7 + $0x68] sm:$0xff] }
 0x119   :  { %595 = vmatprep.subr.mxu1 %v490_v47  ;;  %v650_v47 = vld [vmem:[#allocation7 + $0x60] sm:$0xff] }
 0x11a   :  { %596 = vmatpush1.msra.mxu1 %v489_v48  ;;  %v649_v48 = vld [vmem:[#allocation7 + $0x58] sm:$0xff] }
 0x11b   :  { %597 = vmatprep.subr.mxu1 %v552_v49  ;;  %v648_v49 = vld [vmem:[#allocation7 + $0x50] sm:$0xff] }
 0x11c   :  { %598 = vmatpush2.msra.mxu1 %v551_v50  ;;  %v647_v50 = vld [vmem:[#allocation7 + $0x48] sm:$0xff] }
 0x11d   :  { %599 = vmatprep.subr.mxu1 %v550_v51  ;;  %v646_v51 = vld [vmem:[#allocation7 + $0x40] sm:$0xff] }
 0x11e   :  { %600 = vmatpush2.msra.mxu1 %v549_v52  ;;  %v645_v52 = vld [vmem:[#allocation7 + $0x38] sm:$0xff] }
 0x11f   :  { %601 = vmatprep.subr.mxu1 %v548_v53  ;;  %v644_v53 = vld [vmem:[#allocation7 + $0x30] sm:$0xff] }
 0x120   :  { %602 = vmatpush2.msra.mxu1 %v547_v54  ;;  %v643_v54 = vld [vmem:[#allocation7 + $0x28] sm:$0xff] }
 0x121   :  { %603 = vmatprep.subr.mxu1 %v546_v55  ;;  %v642_v55 = vld [vmem:[#allocation7 + $0x20] sm:$0xff] }
 0x122   :  { %604 = vmatpush2.msra.mxu1 %v545_v56  ;;  %v641_v56 = vld [vmem:[#allocation7 + $0x18] sm:$0xff] }
 0x123   :  { %605 = vmatprep.subr.mxu1 %v544_v57  ;;  %v640_v57 = vld [vmem:[#allocation7 + $0x10] sm:$0xff] }
 0x124   :  { %606 = vmatpush2.msra.mxu1 %v543_v58  ;;  %v639_v58 = vld [vmem:[#allocation7 + $0x8] sm:$0xff] }
 0x125   :  { %607 = vmatprep.subr.mxu1 %v542_v59  ;;  %v638_v59 = vld [vmem:[#allocation7] sm:$0xff] }
 0x126   :  { %608 = vmatpush2.msra.mxu1 %v541_v60  ;;  %v701_v60 = vld [vmem:[#allocation7 + $0x1f8] sm:$0xff] }
 0x127   :  { %609 = vmatprep.subr.mxu1 %v540_v61  ;;  %v700_v61 = vld [vmem:[#allocation7 + $0x1f0] sm:$0xff] }
 0x128   :  { %610 = vmatpush2.msra.mxu1 %v539_v63  ;;  %v699_v63 = vld [vmem:[#allocation7 + $0x1e8] sm:$0xff] }
 0x129   :  { %611 = vmatprep.subr.mxu1 %v538_v1  ;;  %v698_v1 = vld [vmem:[#allocation7 + $0x1e0] sm:$0xff] }
 0x12a   :  { %612 = vmatpush2.msra.mxu1 %v537_v2  ;;  %v697_v2 = vld [vmem:[#allocation7 + $0x1d8] sm:$0xff] }
 0x12b   :  { %613 = vmatprep.subr.mxu1 %v536_v3  ;;  %v696_v3 = vld [vmem:[#allocation7 + $0x1d0] sm:$0xff] }
 0x12c   :  { %614 = vmatpush2.msra.mxu1 %v535_v4  ;;  %v695_v4 = vld [vmem:[#allocation7 + $0x1c8] sm:$0xff] }
 0x12d   :  { %615 = vmatprep.subr.mxu1 %v534_v5  ;;  %v694_v5 = vld [vmem:[#allocation7 + $0x1c0] sm:$0xff] }
 0x12e   :  { %616 = vmatpush2.msra.mxu1 %v533_v6  ;;  %v693_v6 = vld [vmem:[#allocation7 + $0x1b8] sm:$0xff] }
 0x12f   :  { %617 = vmatprep.subr.mxu1 %v532_v7  ;;  %v692_v7 = vld [vmem:[#allocation7 + $0x1b0] sm:$0xff] }
 0x130   :  { %618 = vmatpush2.msra.mxu1 %v531_v8  ;;  %v691_v8 = vld [vmem:[#allocation7 + $0x1a8] sm:$0xff] }
 0x131   :  { %619 = vmatprep.subr.mxu1 %v530_v9  ;;  %v690_v9 = vld [vmem:[#allocation7 + $0x1a0] sm:$0xff] }
 0x132   :  { %620 = vmatpush2.msra.mxu1 %v529_v10  ;;  %v689_v10 = vld [vmem:[#allocation7 + $0x198] sm:$0xff] }
 0x133   :  { %621 = vmatprep.subr.mxu1 %v528_v20  ;;  %v679_v20 = vld [vmem:[#allocation7 + $0x148] sm:$0xff] }
 0x134   :  { %622 = vmatpush2.msra.mxu1 %v527_v21  ;;  %v678_v21 = vld [vmem:[#allocation7 + $0x140] sm:$0xff] }
 0x135   :  { %623 = vmatprep.subr.mxu1 %v526_v22  ;;  %v404_v22 = vld [vmem:[%s1282_s6] sm:$0x3] }
 0x136   :  { %624 = vmatpush2.msra.mxu1 %v525_v23  ;;  %v409_v23 = vrot.slane %v404_v22, %v1145_v62 }
 0x137   :  { %625 = vmatprep.subr.mxu1 %v524_v24  ;;  %v413_v24 = vrot.slane %v404_v22, %v1150_v0 }
 0x138   :  { %626 = vmatpush2.msra.mxu1 %v523_v25 }
 0x139   :  { %627 = vmatprep.subr.mxu1 %v522_v26 }
 0x13a   :  { %628 = vmatpush2.msra.mxu1 %v521_v27 }
 0x1bb   :  { %v333_v14 = vpop.f32.mrf.mxu1 }
 0x1bc   :  { %v334_v15 = vadd.f32 %v333_v14, %v260_v12  ;;  %v687_v12 = vld [vmem:[#allocation7 + $0x188] sm:$0xff]  ;;  %v685_v14 = vld [vmem:[#allocation7 + $0x178] sm:$0xff] }
 0x1bd   :  { %v335_v16 = vpop.f32.mrf.mxu1 }
 0x1be   :  { %v336_v17 = vadd.f32 %v335_v16, %v264_v13  ;;  %v338_v19 = vmax.f32 %v334_v15, 0.0  ;;  %v686_v13 = vld [vmem:[#allocation7 + $0x180] sm:$0xff]  ;;  %v684_v15 = vld [vmem:[#allocation7 + $0x170] sm:$0xff]  ;;  %v683_v16 = vld [vmem:[#allocation7 + $0x168] sm:$0xff] }
 0x1c0   :  { %v339_v18 = vmax.f32 %v336_v17, 0.0  ;;  %v682_v17 = vld [vmem:[#allocation7 + $0x160] sm:$0xff] }
 0x1c2   :  { %480 = vmatprep.mubr.f32.mxu0 %v339_v18  ;;  %v681_v18 = vld [vmem:[#allocation7 + $0x158] sm:$0xff] }
 0x1c3   :  { %481 = vmatmul.mubr.f32.vlgmr.msra.gmra.mxu0 %v338_v19  ;;  %v680_v19 = vld [vmem:[#allocation7 + $0x150] sm:$0xff] }
 0x1c4   :  { %715 = vmatpush1.msra.mxu0 %v668_v29 }
 0x1c5   :  { %716 = vmatprep.subr.mxu0 %v667_v30 }
 0x1c6   :  { %717 = vmatpush1.msra.mxu0 %v666_v31  ;;  %v677_v31 = vld [vmem:[#allocation7 + $0x138] sm:$0xff] }
 0x1c7   :  { %718 = vmatprep.subr.mxu0 %v665_v32  ;;  %v676_v32 = vld [vmem:[#allocation7 + $0x130] sm:$0xff] }
 0x1c8   :  { %719 = vmatpush1.msra.mxu0 %v664_v33  ;;  %v675_v33 = vld [vmem:[#allocation7 + $0x128] sm:$0xff] }
 0x1c9   :  { %720 = vmatprep.subr.mxu0 %v663_v34  ;;  %v674_v34 = vld [vmem:[#allocation7 + $0x120] sm:$0xff] }
 0x1ca   :  { %721 = vmatpush1.msra.mxu0 %v662_v35  ;;  %v673_v35 = vld [vmem:[#allocation7 + $0x118] sm:$0xff] }
 0x1cb   :  { %722 = vmatprep.subr.mxu0 %v661_v36  ;;  %v672_v36 = vld [vmem:[#allocation7 + $0x110] sm:$0xff] }
 0x1cc   :  { %723 = vmatpush1.msra.mxu0 %v660_v37  ;;  %v671_v37 = vld [vmem:[#allocation7 + $0x108] sm:$0xff] }
 0x1cd   :  { %724 = vmatprep.subr.mxu0 %v659_v38  ;;  %v670_v38 = vld [vmem:[#allocation7 + $0x100] sm:$0xff] }
 0x1ce   :  { %725 = vmatpush1.msra.mxu0 %v658_v39  ;;  %v818_v39 = vld [vmem:[%s1287_s11 + $0xf8] sm:$0xff] }
 0x1cf   :  { %726 = vmatprep.subr.mxu0 %v657_v40  ;;  %v802_v40 = vld [vmem:[%s1287_s11 + $0x78] sm:$0xff]  ;;  %907 = vmatprep.subr.mxu1 %v818_v39 }
 0x1d0   :  { %727 = vmatpush1.msra.mxu0 %v656_v41  ;;  %v817_v41 = vld [vmem:[%s1287_s11 + $0xf0] sm:$0xff] }
 0x1d1   :  { %728 = vmatprep.subr.mxu0 %v655_v42  ;;  %v801_v42 = vld [vmem:[%s1287_s11 + $0x70] sm:$0xff] }
 0x1d2   :  { %729 = vmatpush1.msra.mxu0 %v654_v43  ;;  %v816_v43 = vld [vmem:[%s1287_s11 + $0xe8] sm:$0xff] }
 0x1d3   :  { %730 = vmatprep.subr.mxu0 %v653_v44  ;;  %v800_v44 = vld [vmem:[%s1287_s11 + $0x68] sm:$0xff] }
 0x1d4   :  { %731 = vmatpush1.msra.mxu0 %v652_v45  ;;  %v815_v45 = vld [vmem:[%s1287_s11 + $0xe0] sm:$0xff] }
 0x1d5   :  { %732 = vmatprep.subr.mxu0 %v651_v46  ;;  %v799_v46 = vld [vmem:[%s1287_s11 + $0x60] sm:$0xff] }
 0x1d6   :  { %733 = vmatpush1.msra.mxu0 %v650_v47  ;;  %v814_v47 = vld [vmem:[%s1287_s11 + $0xd8] sm:$0xff] }
 0x1d7   :  { %734 = vmatprep.subr.mxu0 %v649_v48  ;;  %v798_v48 = vld [vmem:[%s1287_s11 + $0x58] sm:$0xff] }
 0x1d8   :  { %735 = vmatpush1.msra.mxu0 %v648_v49  ;;  %v813_v49 = vld [vmem:[%s1287_s11 + $0xd0] sm:$0xff] }
 0x1d9   :  { %736 = vmatprep.subr.mxu0 %v647_v50  ;;  %v797_v50 = vld [vmem:[%s1287_s11 + $0x50] sm:$0xff] }
 0x1da   :  { %737 = vmatpush1.msra.mxu0 %v646_v51  ;;  %v812_v51 = vld [vmem:[%s1287_s11 + $0xc8] sm:$0xff] }
 0x1db   :  { %738 = vmatprep.subr.mxu0 %v645_v52  ;;  %v796_v52 = vld [vmem:[%s1287_s11 + $0x48] sm:$0xff] }
 0x1dc   :  { %739 = vmatpush1.msra.mxu0 %v644_v53  ;;  %v811_v53 = vld [vmem:[%s1287_s11 + $0xc0] sm:$0xff] }
 0x1dd   :  { %740 = vmatprep.subr.mxu0 %v643_v54  ;;  %v795_v54 = vld [vmem:[%s1287_s11 + $0x40] sm:$0xff] }
 0x1de   :  { %741 = vmatpush1.msra.mxu0 %v642_v55  ;;  %v810_v55 = vld [vmem:[%s1287_s11 + $0xb8] sm:$0xff] }
 0x1df   :  { %742 = vmatprep.subr.mxu0 %v641_v56  ;;  %v794_v56 = vld [vmem:[%s1287_s11 + $0x38] sm:$0xff] }
 0x1e0   :  { %743 = vmatpush1.msra.mxu0 %v640_v57  ;;  %v809_v57 = vld [vmem:[%s1287_s11 + $0xb0] sm:$0xff] }
 0x1e1   :  { %744 = vmatprep.subr.mxu0 %v639_v58  ;;  %v793_v58 = vld [vmem:[%s1287_s11 + $0x30] sm:$0xff] }
 0x1e2   :  { %745 = vmatpush1.msra.mxu0 %v638_v59  ;;  %v808_v59 = vld [vmem:[%s1287_s11 + $0xa8] sm:$0xff] }
 0x1e3   :  { %746 = vmatprep.subr.mxu0 %v701_v60  ;;  %v792_v60 = vld [vmem:[%s1287_s11 + $0x28] sm:$0xff] }
 0x1e4   :  { %747 = vmatpush2.msra.mxu0 %v700_v61  ;;  %v807_v61 = vld [vmem:[%s1287_s11 + $0xa0] sm:$0xff] }
 0x1e5   :  { %748 = vmatprep.subr.mxu0 %v699_v63  ;;  %v791_v63 = vld [vmem:[%s1287_s11 + $0x20] sm:$0xff] }
 0x1e6   :  { %749 = vmatpush2.msra.mxu0 %v698_v1  ;;  %v553_v1 = vld [vmem:[%s1284_s8] sm:$0x3] }
 0x1e7   :  { %750 = vmatprep.subr.mxu0 %v697_v2  ;;  %v558_v2 = vrot.slane %v553_v1, %v1145_v62 }
 0x1e8   :  { %751 = vmatpush2.msra.mxu0 %v696_v3  ;;  %v562_v3 = vrot.slane %v553_v1, %v1150_v0 }
 0x1e9   :  { %752 = vmatprep.subr.mxu0 %v695_v4 }
 0x1ea   :  { %753 = vmatpush2.msra.mxu0 %v694_v5 }
 0x1eb   :  { %754 = vmatprep.subr.mxu0 %v693_v6 }
 0x1ec   :  { %755 = vmatpush2.msra.mxu0 %v692_v7 }
 0x1ed   :  { %756 = vmatprep.subr.mxu0 %v691_v8 }
 0x1ee   :  { %757 = vmatpush2.msra.mxu0 %v690_v9 }
 0x1ef   :  { %758 = vmatprep.subr.mxu0 %v689_v10  ;;  %v806_v10 = vld [vmem:[%s1287_s11 + $0x98] sm:$0xff] }
 0x1f0   :  { %759 = vmatpush2.msra.mxu0 %v688_v11  ;;  %v790_v11 = vld [vmem:[%s1287_s11 + $0x18] sm:$0xff] }
 0x1f1   :  { %760 = vmatprep.subr.mxu0 %v687_v12  ;;  %v805_v12 = vld [vmem:[%s1287_s11 + $0x90] sm:$0xff] }
 0x1f2   :  { %761 = vmatpush2.msra.mxu0 %v686_v13  ;;  %v789_v13 = vld [vmem:[%s1287_s11 + $0x10] sm:$0xff] }
 0x1f3   :  { %762 = vmatprep.subr.mxu0 %v685_v14  ;;  %v804_v14 = vld [vmem:[%s1287_s11 + $0x88] sm:$0xff] }
 0x1f4   :  { %763 = vmatpush2.msra.mxu0 %v684_v15  ;;  %v788_v15 = vld [vmem:[%s1287_s11 + $0x8] sm:$0xff] }
 0x1f5   :  { %764 = vmatprep.subr.mxu0 %v683_v16  ;;  %v803_v16 = vld [vmem:[%s1287_s11 + $0x80] sm:$0xff] }
 0x1f6   :  { %765 = vmatpush2.msra.mxu0 %v682_v17  ;;  %v787_v17 = vld [vmem:[%s1287_s11] sm:$0xff] }
 0x1f7   :  { %766 = vmatprep.subr.mxu0 %v681_v18  ;;  %v702_v18 = vld [vmem:[%s1286_s10] sm:$0x3] }
 0x1f8   :  { %767 = vmatpush2.msra.mxu0 %v680_v19  ;;  %v707_v19 = vrot.slane %v702_v18, %v1145_v62 }
 0x1f9   :  { %768 = vmatprep.subr.mxu0 %v679_v20  ;;  %v711_v20 = vrot.slane %v702_v18, %v1150_v0 }
 0x1fa   :  { %769 = vmatpush2.msra.mxu0 %v678_v21 }
 0x1fb   :  { %770 = vmatprep.subr.mxu0 %v677_v31 }
 0x1fc   :  { %771 = vmatpush2.msra.mxu0 %v676_v32 }
 0x1fd   :  { %772 = vmatprep.subr.mxu0 %v675_v33 }
 0x1fe   :  { %773 = vmatpush2.msra.mxu0 %v674_v34 }
 0x1ff   :  { %774 = vmatprep.subr.mxu0 %v673_v35 }
 0x200   :  { %775 = vmatpush2.msra.mxu0 %v672_v36 }
 0x201   :  { %776 = vmatprep.subr.mxu0 %v671_v37 }
 0x202   :  { %777 = vmatpush2.msra.mxu0 %v670_v38 }
 0x283   :  { %v482_v25 = vpop.f32.mrf.mxu0 }
 0x284   :  { %v483_v26 = vadd.f32 %v482_v25, %v409_v23 }
 0x285   :  { %v484_v27 = vpop.f32.mrf.mxu0 }
 0x286   :  { %v485_v28 = vadd.f32 %v484_v27, %v413_v24  ;;  %v487_v30 = vmax.f32 %v483_v26, 0.0 }
 0x288   :  { %v488_v29 = vmax.f32 %v485_v28, 0.0  ;;  %v906_v28 = vld [vmem:[%s1288_s12] ss:$0 sm:$0xff] }
 0x28a   :  { %629 = vmatprep.mubr.f32.mxu1 %v488_v29 }
 0x28b   :  { %630 = vmatmul.mubr.f32.vlgmr.msra.gmra.mxu1 %v487_v30 }
 0x28c   :  { %908 = vmatpush3.msra.mxu1 %v802_v40 }
 0x28d   :  { %909 = vmatprep.subr.mxu1 %v817_v41 }
 0x28e   :  { %910 = vmatpush3.msra.mxu1 %v801_v42 }
 0x28f   :  { %911 = vmatprep.subr.mxu1 %v816_v43 }
 0x290   :  { %912 = vmatpush3.msra.mxu1 %v800_v44 }
 0x291   :  { %913 = vmatprep.subr.mxu1 %v815_v45 }
 0x292   :  { %914 = vmatpush3.msra.mxu1 %v799_v46 }
 0x293   :  { %915 = vmatprep.subr.mxu1 %v814_v47 }
 0x294   :  { %916 = vmatpush3.msra.mxu1 %v798_v48 }
 0x295   :  { %917 = vmatprep.subr.mxu1 %v813_v49 }
 0x296   :  { %918 = vmatpush3.msra.mxu1 %v797_v50 }
 0x297   :  { %919 = vmatprep.subr.mxu1 %v812_v51 }
 0x298   :  { %920 = vmatpush3.msra.mxu1 %v796_v52 }
 0x299   :  { %921 = vmatprep.subr.mxu1 %v811_v53 }
 0x29a   :  { %922 = vmatpush3.msra.mxu1 %v795_v54 }
 0x29b   :  { %923 = vmatprep.subr.mxu1 %v810_v55 }
 0x29c   :  { %924 = vmatpush3.msra.mxu1 %v794_v56 }
 0x29d   :  { %925 = vmatprep.subr.mxu1 %v809_v57 }
 0x29e   :  { %926 = vmatpush3.msra.mxu1 %v793_v58 }
 0x29f   :  { %927 = vmatprep.subr.mxu1 %v808_v59 }
 0x2a0   :  { %928 = vmatpush3.msra.mxu1 %v792_v60 }
 0x2a1   :  { %929 = vmatprep.subr.mxu1 %v807_v61 }
 0x2a2   :  { %930 = vmatpush3.msra.mxu1 %v791_v63 }
 0x2a3   :  { %931 = vmatprep.subr.mxu1 %v806_v10 }
 0x2a4   :  { %932 = vmatpush3.msra.mxu1 %v790_v11 }
 0x2a5   :  { %933 = vmatprep.subr.mxu1 %v805_v12 }
 0x2a6   :  { %934 = vmatpush3.msra.mxu1 %v789_v13 }
 0x2a7   :  { %935 = vmatprep.subr.mxu1 %v804_v14 }
 0x2a8   :  { %936 = vmatpush3.msra.mxu1 %v788_v15 }
 0x2a9   :  { %937 = vmatprep.subr.mxu1 %v803_v16 }
 0x2aa   :  { %938 = vmatpush3.msra.mxu1 %v787_v17 }
 0x34b   :  { %v631_v4 = vpop.f32.mrf.mxu1 }
 0x34c   :  { %v632_v5 = vadd.f32 %v631_v4, %v558_v2 }
 0x34d   :  { %v633_v6 = vpop.f32.mrf.mxu1 }
 0x34e   :  { %v634_v7 = vadd.f32 %v633_v6, %v562_v3  ;;  %v636_v9 = vmax.f32 %v632_v5, 0.0 }
 0x350   :  { %v637_v8 = vmax.f32 %v634_v7, 0.0 }
 0x352   :  { %778 = vmatprep.mubr.f32.mxu0 %v637_v8 }
 0x353   :  { %779 = vmatmul.mubr.f32.vlgmr.msra.gmra.mxu0 %v636_v9 }
 0x413   :  { %v780_v21 = vpop.f32.mrf.mxu0 }
 0x414   :  { %v781_v22 = vadd.f32 %v780_v21, %v707_v19 }
 0x415   :  { %v782_v23 = vpop.f32.mrf.mxu0 }
 0x416   :  { %v783_v24 = vadd.f32 %v782_v23, %v711_v20  ;;  %v785_v26 = vmax.f32 %v781_v22, 0.0 }
 0x418   :  { %v786_v25 = vmax.f32 %v783_v24, 0.0 }
 0x41a   :  { %890 = vmatprep.mubr.f32.mxu1 %v786_v25 }
 0x41b   :  { %891 = vmatmul.mubr.f32.vlgmr.msra.gmra.mxu1 %v785_v26 }
 0x4db   :  { %v939_v27 = vpop.f32.mrf.mxu1 }
 0x4dd   :  { %v940_v29 = vpop.f32.mrf.mxu1 }
 0x4de   :  { %v941_v30 = vadd.f32 %v940_v29, %v939_v27 }
 0x4e0   :  { %v893_v31 = vadd.f32 %v941_v30, %v906_v28 }
 0x4e2   :  { %897 = vst.msk [vmem:[%s1289_s13] sm:$0xff] %vm896_vm1, %v893_v31 }
 0x4e3   :  { %902 = vsyncpa [#allocation3], 1 }
 0x4e4   :  { %903 = vsyncpa [#allocation5], 1 }
 0x4e5   :  { %904 = vsyncpa [#allocation8], 1 }

</bundles_post_ra>
